<compile_context>
chip_gen: v6e
topology: v6e:2x2x1
jax: 0.10.0
libtpu: 0.0.40
codegen_flags: <defaults>
</compile_context>

<pallas_src>
import functools

import numpy as np
import jax
import jax.numpy as jnp
from jax import lax
from jax.experimental import pallas as pl
from jax.experimental.pallas import tpu as pltpu


def _attention_kernel(x_ref, wq_ref, wk_ref, wv_ref, bq_ref, bk_ref, bv_ref,
                      w1_ref, b1_ref, w2_ref, b2_ref, o_ref, attn_ref,
                      *, n_heads, mxu_dtype):
    # x_ref block: (Bb, T, E); attn_ref scratch: (Bb*T, E) f32.
    Bb, T, E = x_ref.shape
    hd = E // n_heads
    scale = np.float32(1.0 / np.sqrt(hd))

    # Flatten (Bb, T, E) -> (Bb*T, E): leading-dim merge, no relayout.
    x = x_ref[...].reshape(Bb * T, E).astype(mxu_dtype)

    # --- QKV projections on the full row slab (one MXU push each) ---
    q = jnp.dot(x, wq_ref[...], preferred_element_type=jnp.float32) + bq_ref[...]
    k = jnp.dot(x, wk_ref[...], preferred_element_type=jnp.float32) + bk_ref[...]
    v = jnp.dot(x, wv_ref[...], preferred_element_type=jnp.float32) + bv_ref[...]

    # Scale q once (O(T*hd) instead of O(T^2) score scaling).
    q = (q * scale).reshape(Bb, T, E)
    k = k.reshape(Bb, T, E)
    v = v.reshape(Bb, T, E)

    # Additive causal mask bias built once per grid step (always f32).
    # Finite large-negative (not -inf) so padded rows can never NaN.
    row = lax.broadcasted_iota(jnp.int32, (1, T, T), 1)
    col = lax.broadcasted_iota(jnp.int32, (1, T, T), 2)
    mask_bias = jnp.where(row >= col, 0.0, -1e30).astype(jnp.float32)

    # TODO(synk): for realistic T, add an innermost 'arbitrary' kv-block grid
    # axis with online-softmax m/l/acc VMEM scratch instead of materializing
    # the full (Bb, T, T) scores per head.

    # --- per-head causal attention, batched over batch; outputs go straight
    #     into the VMEM slab (no lane-axis concat) ---
    for h in range(n_heads):  # static unroll; heads are contiguous E-slabs
        sl = slice(h * hd, (h + 1) * hd)
        qh = q[:, :, sl].astype(mxu_dtype)   # (Bb, T, hd)
        kh = k[:, :, sl].astype(mxu_dtype)
        vh = v[:, :, sl].astype(mxu_dtype)

        # scores: contract head dim, no explicit transpose.
        s = jnp.einsum("bqd,bkd->bqk", qh, kh,
                       preferred_element_type=jnp.float32)      # (Bb, T, T)
        s = s + mask_bias                                        # single vadd

        m = jnp.max(s, axis=-1, keepdims=True)
        p = jnp.exp(s - m)
        l = jnp.sum(p, axis=-1, keepdims=True)

        # EUP approx reciprocal + one Newton step (~full f32 precision).
        inv = pl.reciprocal(l, approx=True)
        inv = inv * (2.0 - l * inv)

        oh = jnp.einsum("bqk,bkd->bqd", p.astype(mxu_dtype), vh,
                        preferred_element_type=jnp.float32)      # (Bb, T, hd)
        # normalize after PV (T*hd muls, not T*T); store into the head's slab.
        attn_ref[:, sl] = (oh * inv).reshape(Bb * T, hd)

    # --- FFN: linear1 -> relu -> linear2, on the full (Bb*T, E) slab ---
    attn = attn_ref[...].astype(mxu_dtype)
    h1 = jnp.dot(attn, w1_ref[...], preferred_element_type=jnp.float32) + b1_ref[...]
    h1 = jnp.maximum(h1, 0.0).astype(mxu_dtype)
    out = jnp.dot(h1, w2_ref[...], preferred_element_type=jnp.float32) + b2_ref[...]

    o_ref[...] = out.reshape(Bb, T, E).astype(o_ref.dtype)


def prepare_attention_params(params, n_heads, mxu_dtype=jnp.float32):
    """One-time weight preparation (hoisted out of the forward path).

    Splits the fused qkv weight into contiguous per-(q|k|v) matrices that
    preserve the PyTorch view(B,T,H,3*hd)+split semantics: row
    (h*3*hd + s*hd + d) of wqkv is (head h, q/k/v s, dim d). Weights are
    stored (in, out) so the kernel does plain x @ W. Biases stay f32
    (they are added to the f32 MXU accumulator).
    """
    E = params["w1"].shape[0]
    assert E % n_heads == 0
    hd = E // n_heads

    wqkv = jnp.asarray(params["wqkv"])            # (3E, E), torch (out, in)
    bqkv = jnp.asarray(params["bqkv"])            # (3E,)
    w3 = wqkv.reshape(n_heads, 3, hd, E)
    b3 = bqkv.reshape(n_heads, 3, hd)

    prepped = {
        "wq": w3[:, 0].reshape(E, E).T.astype(mxu_dtype),   # (in=E, out=E)
        "wk": w3[:, 1].reshape(E, E).T.astype(mxu_dtype),
        "wv": w3[:, 2].reshape(E, E).T.astype(mxu_dtype),
        "bq": b3[:, 0].reshape(1, E).astype(jnp.float32),
        "bk": b3[:, 1].reshape(1, E).astype(jnp.float32),
        "bv": b3[:, 2].reshape(1, E).astype(jnp.float32),
        "w1": jnp.asarray(params["w1"]).T.astype(mxu_dtype),
        "b1": jnp.asarray(params["b1"]).reshape(1, E).astype(jnp.float32),
        "w2": jnp.asarray(params["w2"]).T.astype(mxu_dtype),
        "b2": jnp.asarray(params["b2"]).reshape(1, E).astype(jnp.float32),
    }
    # Materialize now so no transpose runs on the per-call path.
    return jax.tree_util.tree_map(jax.block_until_ready, prepped)


def _default_block_b(B):
    """Whole batch per grid step, except v7x where >=2 steps use both TCs."""
    try:
        kind = jax.devices()[0].device_kind.lower()
        if "v7" in kind and B >= 2 and B % 2 == 0:
            return B // 2
    except Exception:
        pass
    return B


def attention_forward(x, prepped, n_heads, *, block_b=None):
    """x: (B, T, E) float32; prepped: output of prepare_attention_params."""
    B, T, E = x.shape
    assert E % n_heads == 0

    if block_b is None:
        block_b = _default_block_b(B)
    assert B % block_b == 0
    grid = (B // block_b,)

    mxu_dtype = prepped["wq"].dtype
    kernel = functools.partial(_attention_kernel, n_heads=n_heads,
                               mxu_dtype=mxu_dtype)

    act_spec = pl.BlockSpec((block_b, T, E), lambda b: (b, 0, 0))
    weight_spec = pl.BlockSpec((E, E), lambda b: (0, 0))   # grid-invariant
    bias_spec = pl.BlockSpec((1, E), lambda b: (0, 0))

    # Advisory cost hint for XLA's scheduler around the custom call.
    wbytes = 5 * E * E * np.dtype(mxu_dtype).itemsize + 5 * E * 4
    cost = pl.CostEstimate(
        flops=int(10 * B * T * E * E + 4 * B * T * T * E),
        transcendentals=int(B * n_heads * T * T),
        bytes_accessed=int(2 * B * T * E * 4 + wbytes),
    )

    return pl.pallas_call(
        kernel,
        out_shape=jax.ShapeDtypeStruct((B, T, E), x.dtype),
        grid=grid,
        in_specs=[
            act_spec,
            weight_spec, weight_spec, weight_spec,
            bias_spec, bias_spec, bias_spec,
            weight_spec, bias_spec,
            weight_spec, bias_spec,
        ],
        out_specs=act_spec,
        scratch_shapes=[pltpu.VMEM((block_b * T, E), jnp.float32)],
        compiler_params=pltpu.CompilerParams(
            dimension_semantics=("parallel",)),
        cost_estimate=cost,
    )(x, prepped["wq"], prepped["wk"], prepped["wv"],
      prepped["bq"], prepped["bk"], prepped["bv"],
      prepped["w1"], prepped["b1"], prepped["w2"], prepped["b2"])


def _reference(x, params, n_heads):
    """Pure-JAX reference mirroring the PyTorch forward exactly."""
    B, T, E = x.shape
    hd3 = 3 * E // n_heads
    hd = hd3 // 3
    qkv = x @ params["wqkv"].T + params["bqkv"]                   # (B, T, 3E)
    qkv = qkv.reshape(B, T, n_heads, hd3).transpose(0, 2, 1, 3)   # (B, H, T, 3hd)
    q, k, v = qkv[..., :hd], qkv[..., hd:2 * hd], qkv[..., 2 * hd:]
    mask = jnp.tril(jnp.ones((T, T), dtype=bool))
    s = jnp.where(mask, jnp.einsum("bhqd,bhkd->bhqk", q, k), -jnp.inf) / np.sqrt(hd)
    p = jax.nn.softmax(s, axis=-1)
    o = jnp.einsum("bhqk,bhkd->bhqd", p, v).transpose(0, 2, 1, 3).reshape(B, T, E)
    h1 = jnp.maximum(o @ params["w1"].T + params["b1"], 0.0)
    return h1 @ params["w2"].T + params["b2"]


if __name__ == "__main__":
    B, T, E, H = 2, 8, 32, 4

    key = jax.random.PRNGKey(0)
    ks = jax.random.split(key, 8)
    scale = 1.0 / np.sqrt(E)
    params = {
        "wqkv": jax.random.uniform(ks[0], (3 * E, E), jnp.float32, -scale, scale),
        "bqkv": jax.random.uniform(ks[1], (3 * E,), jnp.float32, -scale, scale),
        "w1": jax.random.uniform(ks[2], (E, E), jnp.float32, -scale, scale),
        "b1": jax.random.uniform(ks[3], (E,), jnp.float32, -scale, scale),
        "w2": jax.random.uniform(ks[4], (E, E), jnp.float32, -scale, scale),
        "b2": jax.random.uniform(ks[5], (E,), jnp.float32, -scale, scale),
    }
    x = jax.random.normal(ks[6], (B, T, E), jnp.float32)

    # One-time weight prep (f32 MXU path: exact parity with the reference;
    # pass mxu_dtype=jnp.bfloat16 here on v6e/v7x for 2x MXU throughput).
    prepped = prepare_attention_params(params, H, mxu_dtype=jnp.float32)

    out = attention_forward(x, prepped, H)
    out = jax.block_until_ready(out)

    ref = _reference(x, params, H)
    np.testing.assert_allclose(np.asarray(out), np.asarray(ref), rtol=2e-4, atol=2e-4)

    print("KERNEL_OK")
</pallas_src>

<mosaic_0001>
module attributes {stable_mosaic.version = 11 : i64} {
  func.func @_attention_kernel(%arg0: i32, %arg1: memref<2x8x32xf32, #tpu.memory_space<vmem>>, %arg2: memref<32x32xf32, #tpu.memory_space<vmem>>, %arg3: memref<32x32xf32, #tpu.memory_space<vmem>>, %arg4: memref<32x32xf32, #tpu.memory_space<vmem>>, %arg5: memref<1x32xf32, #tpu.memory_space<vmem>>, %arg6: memref<1x32xf32, #tpu.memory_space<vmem>>, %arg7: memref<1x32xf32, #tpu.memory_space<vmem>>, %arg8: memref<32x32xf32, #tpu.memory_space<vmem>>, %arg9: memref<1x32xf32, #tpu.memory_space<vmem>>, %arg10: memref<32x32xf32, #tpu.memory_space<vmem>>, %arg11: memref<1x32xf32, #tpu.memory_space<vmem>>, %arg12: memref<2x8x32xf32, #tpu.memory_space<vmem>>, %arg13: memref<16x32xf32, #tpu.memory_space<vmem>>) attributes {dimension_semantics = [#tpu.dimension_semantics<parallel>], iteration_bounds = array<i64: 1>, scalar_prefetch = 0 : i64, scratch_operands = 1 : i64, tpu.core_type = #tpu.core_type<tc>, window_params = [{transform_indices = @transform_0, window_bounds = array<i64: 2, 8, 32>}, {pipeline_mode = #tpu.pipeline_mode<synchronous>, transform_indices = @transform_1, window_bounds = array<i64: 32, 32>}, {pipeline_mode = #tpu.pipeline_mode<synchronous>, transform_indices = @transform_2, window_bounds = array<i64: 32, 32>}, {pipeline_mode = #tpu.pipeline_mode<synchronous>, transform_indices = @transform_3, window_bounds = array<i64: 32, 32>}, {pipeline_mode = #tpu.pipeline_mode<synchronous>, transform_indices = @transform_4, window_bounds = array<i64: 1, 32>}, {pipeline_mode = #tpu.pipeline_mode<synchronous>, transform_indices = @transform_5, window_bounds = array<i64: 1, 32>}, {pipeline_mode = #tpu.pipeline_mode<synchronous>, transform_indices = @transform_6, window_bounds = array<i64: 1, 32>}, {pipeline_mode = #tpu.pipeline_mode<synchronous>, transform_indices = @transform_7, window_bounds = array<i64: 32, 32>}, {pipeline_mode = #tpu.pipeline_mode<synchronous>, transform_indices = @transform_8, window_bounds = array<i64: 1, 32>}, {pipeline_mode = #tpu.pipeline_mode<synchronous>, transform_indices = @transform_9, window_bounds = array<i64: 32, 32>}, {pipeline_mode = #tpu.pipeline_mode<synchronous>, transform_indices = @transform_10, window_bounds = array<i64: 1, 32>}, {transform_indices = @transform_11, window_bounds = array<i64: 2, 8, 32>}]} {
    %c0 = arith.constant 0 : index
    %c0_0 = arith.constant 0 : index
    %c0_1 = arith.constant 0 : index
    %0 = vector.load %arg1[%c0, %c0_0, %c0_1] : memref<2x8x32xf32, #tpu.memory_space<vmem>>, vector<2x8x32xf32>
    %1 = vector.shape_cast %0 : vector<2x8x32xf32> to vector<16x32xf32>
    %c0_2 = arith.constant 0 : index
    %c0_3 = arith.constant 0 : index
    %2 = vector.load %arg2[%c0_2, %c0_3] : memref<32x32xf32, #tpu.memory_space<vmem>>, vector<32x32xf32>
    %cst = arith.constant dense<0.000000e+00> : vector<16x32xf32>
    %3 = tpu.matmul %1, %2, %cst {dimension_numbers = #tpu.dot_dimension_numbers<[1], [0], [0], [1], [0, 0, 1, 1], [], []>} : vector<16x32xf32>, vector<32x32xf32>, vector<16x32xf32> -> vector<16x32xf32>
    %c0_4 = arith.constant 0 : index
    %c0_5 = arith.constant 0 : index
    %4 = vector.load %arg5[%c0_4, %c0_5] : memref<1x32xf32, #tpu.memory_space<vmem>>, vector<1x32xf32>
    %5 = vector.broadcast %4 : vector<1x32xf32> to vector<16x32xf32>
    %6 = arith.addf %3, %5 : vector<16x32xf32>
    %c0_6 = arith.constant 0 : index
    %c0_7 = arith.constant 0 : index
    %7 = vector.load %arg3[%c0_6, %c0_7] : memref<32x32xf32, #tpu.memory_space<vmem>>, vector<32x32xf32>
    %cst_8 = arith.constant dense<0.000000e+00> : vector<16x32xf32>
    %8 = tpu.matmul %1, %7, %cst_8 {dimension_numbers = #tpu.dot_dimension_numbers<[1], [0], [0], [1], [0, 0, 1, 1], [], []>} : vector<16x32xf32>, vector<32x32xf32>, vector<16x32xf32> -> vector<16x32xf32>
    %c0_9 = arith.constant 0 : index
    %c0_10 = arith.constant 0 : index
    %9 = vector.load %arg6[%c0_9, %c0_10] : memref<1x32xf32, #tpu.memory_space<vmem>>, vector<1x32xf32>
    %10 = vector.broadcast %9 : vector<1x32xf32> to vector<16x32xf32>
    %11 = arith.addf %8, %10 : vector<16x32xf32>
    %c0_11 = arith.constant 0 : index
    %c0_12 = arith.constant 0 : index
    %12 = vector.load %arg4[%c0_11, %c0_12] : memref<32x32xf32, #tpu.memory_space<vmem>>, vector<32x32xf32>
    %cst_13 = arith.constant dense<0.000000e+00> : vector<16x32xf32>
    %13 = tpu.matmul %1, %12, %cst_13 {dimension_numbers = #tpu.dot_dimension_numbers<[1], [0], [0], [1], [0, 0, 1, 1], [], []>} : vector<16x32xf32>, vector<32x32xf32>, vector<16x32xf32> -> vector<16x32xf32>
    %c0_14 = arith.constant 0 : index
    %c0_15 = arith.constant 0 : index
    %14 = vector.load %arg7[%c0_14, %c0_15] : memref<1x32xf32, #tpu.memory_space<vmem>>, vector<1x32xf32>
    %15 = vector.broadcast %14 : vector<1x32xf32> to vector<16x32xf32>
    %16 = arith.addf %13, %15 : vector<16x32xf32>
    %cst_16 = arith.constant 0.353553385 : f32
    %17 = vector.broadcast %cst_16 : f32 to vector<16x32xf32>
    %18 = arith.mulf %6, %17 : vector<16x32xf32>
    %19 = vector.shape_cast %18 : vector<16x32xf32> to vector<2x8x32xf32>
    %20 = vector.shape_cast %11 : vector<16x32xf32> to vector<2x8x32xf32>
    %21 = vector.shape_cast %16 : vector<16x32xf32> to vector<2x8x32xf32>
    %22 = tpu.iota {dimensions = array<i32: 1>} : vector<1x8x8xi32>
    %23 = tpu.iota {dimensions = array<i32: 2>} : vector<1x8x8xi32>
    %24 = arith.cmpi sge, %22, %23 : vector<1x8x8xi32>
    %cst_17 = arith.constant 0.000000e+00 : f32
    %cst_18 = arith.constant -1.000000e+30 : f32
    %25 = vector.broadcast %cst_17 : f32 to vector<1x8x8xf32>
    %26 = vector.broadcast %cst_18 : f32 to vector<1x8x8xf32>
    %27 = arith.select %24, %25, %26 : vector<1x8x8xi1>, vector<1x8x8xf32>
    %28 = vector.extract_strided_slice %19 {offsets = [0, 0, 0], sizes = [2, 8, 8], strides = [1, 1, 1]} : vector<2x8x32xf32> to vector<2x8x8xf32>
    %29 = vector.extract_strided_slice %20 {offsets = [0, 0, 0], sizes = [2, 8, 8], strides = [1, 1, 1]} : vector<2x8x32xf32> to vector<2x8x8xf32>
    %30 = vector.extract_strided_slice %21 {offsets = [0, 0, 0], sizes = [2, 8, 8], strides = [1, 1, 1]} : vector<2x8x32xf32> to vector<2x8x8xf32>
    "tpu.trace_start"() <{level = 10 : i32, message = "bqd,bkd->bqk"}> : () -> ()
    %cst_19 = arith.constant dense<0.000000e+00> : vector<2x8x8xf32>
    %31 = tpu.matmul %28, %29, %cst_19 {dimension_numbers = #tpu.dot_dimension_numbers<[2], [2], [1], [1], [0, 0, 0, 1, 1, 1], [0], [0]>} : vector<2x8x8xf32>, vector<2x8x8xf32>, vector<2x8x8xf32> -> vector<2x8x8xf32>
    "tpu.trace_stop"() : () -> ()
    %32 = vector.broadcast %27 : vector<1x8x8xf32> to vector<2x8x8xf32>
    %33 = arith.addf %31, %32 : vector<2x8x8xf32>
    %cst_20 = arith.constant dense<0xFF800000> : vector<2x8xf32>
    %34 = vector.multi_reduction <maximumf>, %33, %cst_20 [2] : vector<2x8x8xf32> to vector<2x8xf32>
    %35 = vector.shape_cast %34 : vector<2x8xf32> to vector<2x8x1xf32>
    %36 = vector.broadcast %35 : vector<2x8x1xf32> to vector<2x8x8xf32>
    %37 = arith.subf %33, %36 : vector<2x8x8xf32>
    %38 = math.exp %37 : vector<2x8x8xf32>
    %cst_21 = arith.constant dense<0.000000e+00> : vector<2x8xf32>
    %39 = vector.multi_reduction <add>, %38, %cst_21 [2] : vector<2x8x8xf32> to vector<2x8xf32>
    %40 = vector.shape_cast %39 : vector<2x8xf32> to vector<2x8x1xf32>
    %41 = tpu.reciprocal %40 {approx = true} : vector<2x8x1xf32> -> vector<2x8x1xf32>
    %42 = arith.mulf %40, %41 : vector<2x8x1xf32>
    %cst_22 = arith.constant 2.000000e+00 : f32
    %43 = vector.broadcast %cst_22 : f32 to vector<2x8x1xf32>
    %44 = arith.subf %43, %42 : vector<2x8x1xf32>
    %45 = arith.mulf %41, %44 : vector<2x8x1xf32>
    "tpu.trace_start"() <{level = 10 : i32, message = "bqk,bkd->bqd"}> : () -> ()
    %cst_23 = arith.constant dense<0.000000e+00> : vector<2x8x8xf32>
    %46 = tpu.matmul %38, %30, %cst_23 {dimension_numbers = #tpu.dot_dimension_numbers<[2], [1], [1], [2], [0, 0, 0, 1, 1, 2], [0], [0]>} : vector<2x8x8xf32>, vector<2x8x8xf32>, vector<2x8x8xf32> -> vector<2x8x8xf32>
    "tpu.trace_stop"() : () -> ()
    %47 = vector.broadcast %45 : vector<2x8x1xf32> to vector<2x8x8xf32>
    %48 = arith.mulf %46, %47 : vector<2x8x8xf32>
    %49 = vector.shape_cast %48 : vector<2x8x8xf32> to vector<16x8xf32>
    %c0_24 = arith.constant 0 : index
    %c0_25 = arith.constant 0 : index
    %50 = vector.load %arg13[%c0_24, %c0_25] : memref<16x32xf32, #tpu.memory_space<vmem>>, vector<16x8xf32>
    tpu.vector_store %arg13[%c0_24, %c0_25], %49 {strides = array<i32>} : memref<16x32xf32, #tpu.memory_space<vmem>>, vector<16x8xf32>,
    %51 = vector.extract_strided_slice %19 {offsets = [0, 0, 8], sizes = [2, 8, 8], strides = [1, 1, 1]} : vector<2x8x32xf32> to vector<2x8x8xf32>
    %52 = vector.extract_strided_slice %20 {offsets = [0, 0, 8], sizes = [2, 8, 8], strides = [1, 1, 1]} : vector<2x8x32xf32> to vector<2x8x8xf32>
    %53 = vector.extract_strided_slice %21 {offsets = [0, 0, 8], sizes = [2, 8, 8], strides = [1, 1, 1]} : vector<2x8x32xf32> to vector<2x8x8xf32>
    "tpu.trace_start"() <{level = 10 : i32, message = "bqd,bkd->bqk"}> : () -> ()
    %cst_26 = arith.constant dense<0.000000e+00> : vector<2x8x8xf32>
    %54 = tpu.matmul %51, %52, %cst_26 {dimension_numbers = #tpu.dot_dimension_numbers<[2], [2], [1], [1], [0, 0, 0, 1, 1, 1], [0], [0]>} : vector<2x8x8xf32>, vector<2x8x8xf32>, vector<2x8x8xf32> -> vector<2x8x8xf32>
    "tpu.trace_stop"() : () -> ()
    %55 = vector.broadcast %27 : vector<1x8x8xf32> to vector<2x8x8xf32>
    %56 = arith.addf %54, %55 : vector<2x8x8xf32>
    %cst_27 = arith.constant dense<0xFF800000> : vector<2x8xf32>
    %57 = vector.multi_reduction <maximumf>, %56, %cst_27 [2] : vector<2x8x8xf32> to vector<2x8xf32>
    %58 = vector.shape_cast %57 : vector<2x8xf32> to vector<2x8x1xf32>
    %59 = vector.broadcast %58 : vector<2x8x1xf32> to vector<2x8x8xf32>
    %60 = arith.subf %56, %59 : vector<2x8x8xf32>
    %61 = math.exp %60 : vector<2x8x8xf32>
    %cst_28 = arith.constant dense<0.000000e+00> : vector<2x8xf32>
    %62 = vector.multi_reduction <add>, %61, %cst_28 [2] : vector<2x8x8xf32> to vector<2x8xf32>
    %63 = vector.shape_cast %62 : vector<2x8xf32> to vector<2x8x1xf32>
    %64 = tpu.reciprocal %63 {approx = true} : vector<2x8x1xf32> -> vector<2x8x1xf32>
    %65 = arith.mulf %63, %64 : vector<2x8x1xf32>
    %cst_29 = arith.constant 2.000000e+00 : f32
    %66 = vector.broadcast %cst_29 : f32 to vector<2x8x1xf32>
    %67 = arith.subf %66, %65 : vector<2x8x1xf32>
    %68 = arith.mulf %64, %67 : vector<2x8x1xf32>
    "tpu.trace_start"() <{level = 10 : i32, message = "bqk,bkd->bqd"}> : () -> ()
    %cst_30 = arith.constant dense<0.000000e+00> : vector<2x8x8xf32>
    %69 = tpu.matmul %61, %53, %cst_30 {dimension_numbers = #tpu.dot_dimension_numbers<[2], [1], [1], [2], [0, 0, 0, 1, 1, 2], [0], [0]>} : vector<2x8x8xf32>, vector<2x8x8xf32>, vector<2x8x8xf32> -> vector<2x8x8xf32>
    "tpu.trace_stop"() : () -> ()
    %70 = vector.broadcast %68 : vector<2x8x1xf32> to vector<2x8x8xf32>
    %71 = arith.mulf %69, %70 : vector<2x8x8xf32>
    %72 = vector.shape_cast %71 : vector<2x8x8xf32> to vector<16x8xf32>
    %c0_31 = arith.constant 0 : index
    %c8 = arith.constant 8 : index
    %73 = vector.load %arg13[%c0_31, %c8] : memref<16x32xf32, #tpu.memory_space<vmem>>, vector<16x8xf32>
    tpu.vector_store %arg13[%c0_31, %c8], %72 {strides = array<i32>} : memref<16x32xf32, #tpu.memory_space<vmem>>, vector<16x8xf32>,
    %74 = vector.extract_strided_slice %19 {offsets = [0, 0, 16], sizes = [2, 8, 8], strides = [1, 1, 1]} : vector<2x8x32xf32> to vector<2x8x8xf32>
    %75 = vector.extract_strided_slice %20 {offsets = [0, 0, 16], sizes = [2, 8, 8], strides = [1, 1, 1]} : vector<2x8x32xf32> to vector<2x8x8xf32>
    %76 = vector.extract_strided_slice %21 {offsets = [0, 0, 16], sizes = [2, 8, 8], strides = [1, 1, 1]} : vector<2x8x32xf32> to vector<2x8x8xf32>
    "tpu.trace_start"() <{level = 10 : i32, message = "bqd,bkd->bqk"}> : () -> ()
    %cst_32 = arith.constant dense<0.000000e+00> : vector<2x8x8xf32>
    %77 = tpu.matmul %74, %75, %cst_32 {dimension_numbers = #tpu.dot_dimension_numbers<[2], [2], [1], [1], [0, 0, 0, 1, 1, 1], [0], [0]>} : vector<2x8x8xf32>, vector<2x8x8xf32>, vector<2x8x8xf32> -> vector<2x8x8xf32>
    "tpu.trace_stop"() : () -> ()
    %78 = vector.broadcast %27 : vector<1x8x8xf32> to vector<2x8x8xf32>
    %79 = arith.addf %77, %78 : vector<2x8x8xf32>
    %cst_33 = arith.constant dense<0xFF800000> : vector<2x8xf32>
    %80 = vector.multi_reduction <maximumf>, %79, %cst_33 [2] : vector<2x8x8xf32> to vector<2x8xf32>
    %81 = vector.shape_cast %80 : vector<2x8xf32> to vector<2x8x1xf32>
    %82 = vector.broadcast %81 : vector<2x8x1xf32> to vector<2x8x8xf32>
    %83 = arith.subf %79, %82 : vector<2x8x8xf32>
    %84 = math.exp %83 : vector<2x8x8xf32>
    %cst_34 = arith.constant dense<0.000000e+00> : vector<2x8xf32>
    %85 = vector.multi_reduction <add>, %84, %cst_34 [2] : vector<2x8x8xf32> to vector<2x8xf32>
    %86 = vector.shape_cast %85 : vector<2x8xf32> to vector<2x8x1xf32>
    %87 = tpu.reciprocal %86 {approx = true} : vector<2x8x1xf32> -> vector<2x8x1xf32>
    %88 = arith.mulf %86, %87 : vector<2x8x1xf32>
    %cst_35 = arith.constant 2.000000e+00 : f32
    %89 = vector.broadcast %cst_35 : f32 to vector<2x8x1xf32>
    %90 = arith.subf %89, %88 : vector<2x8x1xf32>
    %91 = arith.mulf %87, %90 : vector<2x8x1xf32>
    "tpu.trace_start"() <{level = 10 : i32, message = "bqk,bkd->bqd"}> : () -> ()
    %cst_36 = arith.constant dense<0.000000e+00> : vector<2x8x8xf32>
    %92 = tpu.matmul %84, %76, %cst_36 {dimension_numbers = #tpu.dot_dimension_numbers<[2], [1], [1], [2], [0, 0, 0, 1, 1, 2], [0], [0]>} : vector<2x8x8xf32>, vector<2x8x8xf32>, vector<2x8x8xf32> -> vector<2x8x8xf32>
    "tpu.trace_stop"() : () -> ()
    %93 = vector.broadcast %91 : vector<2x8x1xf32> to vector<2x8x8xf32>
    %94 = arith.mulf %92, %93 : vector<2x8x8xf32>
    %95 = vector.shape_cast %94 : vector<2x8x8xf32> to vector<16x8xf32>
    %c0_37 = arith.constant 0 : index
    %c16 = arith.constant 16 : index
    %96 = vector.load %arg13[%c0_37, %c16] : memref<16x32xf32, #tpu.memory_space<vmem>>, vector<16x8xf32>
    tpu.vector_store %arg13[%c0_37, %c16], %95 {strides = array<i32>} : memref<16x32xf32, #tpu.memory_space<vmem>>, vector<16x8xf32>,
    %97 = vector.extract_strided_slice %19 {offsets = [0, 0, 24], sizes = [2, 8, 8], strides = [1, 1, 1]} : vector<2x8x32xf32> to vector<2x8x8xf32>
    %98 = vector.extract_strided_slice %20 {offsets = [0, 0, 24], sizes = [2, 8, 8], strides = [1, 1, 1]} : vector<2x8x32xf32> to vector<2x8x8xf32>
    %99 = vector.extract_strided_slice %21 {offsets = [0, 0, 24], sizes = [2, 8, 8], strides = [1, 1, 1]} : vector<2x8x32xf32> to vector<2x8x8xf32>
    "tpu.trace_start"() <{level = 10 : i32, message = "bqd,bkd->bqk"}> : () -> ()
    %cst_38 = arith.constant dense<0.000000e+00> : vector<2x8x8xf32>
    %100 = tpu.matmul %97, %98, %cst_38 {dimension_numbers = #tpu.dot_dimension_numbers<[2], [2], [1], [1], [0, 0, 0, 1, 1, 1], [0], [0]>} : vector<2x8x8xf32>, vector<2x8x8xf32>, vector<2x8x8xf32> -> vector<2x8x8xf32>
    "tpu.trace_stop"() : () -> ()
    %101 = vector.broadcast %27 : vector<1x8x8xf32> to vector<2x8x8xf32>
    %102 = arith.addf %100, %101 : vector<2x8x8xf32>
    %cst_39 = arith.constant dense<0xFF800000> : vector<2x8xf32>
    %103 = vector.multi_reduction <maximumf>, %102, %cst_39 [2] : vector<2x8x8xf32> to vector<2x8xf32>
    %104 = vector.shape_cast %103 : vector<2x8xf32> to vector<2x8x1xf32>
    %105 = vector.broadcast %104 : vector<2x8x1xf32> to vector<2x8x8xf32>
    %106 = arith.subf %102, %105 : vector<2x8x8xf32>
    %107 = math.exp %106 : vector<2x8x8xf32>
    %cst_40 = arith.constant dense<0.000000e+00> : vector<2x8xf32>
    %108 = vector.multi_reduction <add>, %107, %cst_40 [2] : vector<2x8x8xf32> to vector<2x8xf32>
    %109 = vector.shape_cast %108 : vector<2x8xf32> to vector<2x8x1xf32>
    %110 = tpu.reciprocal %109 {approx = true} : vector<2x8x1xf32> -> vector<2x8x1xf32>
    %111 = arith.mulf %109, %110 : vector<2x8x1xf32>
    %cst_41 = arith.constant 2.000000e+00 : f32
    %112 = vector.broadcast %cst_41 : f32 to vector<2x8x1xf32>
    %113 = arith.subf %112, %111 : vector<2x8x1xf32>
    %114 = arith.mulf %110, %113 : vector<2x8x1xf32>
    "tpu.trace_start"() <{level = 10 : i32, message = "bqk,bkd->bqd"}> : () -> ()
    %cst_42 = arith.constant dense<0.000000e+00> : vector<2x8x8xf32>
    %115 = tpu.matmul %107, %99, %cst_42 {dimension_numbers = #tpu.dot_dimension_numbers<[2], [1], [1], [2], [0, 0, 0, 1, 1, 2], [0], [0]>} : vector<2x8x8xf32>, vector<2x8x8xf32>, vector<2x8x8xf32> -> vector<2x8x8xf32>
    "tpu.trace_stop"() : () -> ()
    %116 = vector.broadcast %114 : vector<2x8x1xf32> to vector<2x8x8xf32>
    %117 = arith.mulf %115, %116 : vector<2x8x8xf32>
    %118 = vector.shape_cast %117 : vector<2x8x8xf32> to vector<16x8xf32>
    %c0_43 = arith.constant 0 : index
    %c24 = arith.constant 24 : index
    %119 = vector.load %arg13[%c0_43, %c24] : memref<16x32xf32, #tpu.memory_space<vmem>>, vector<16x8xf32>
    tpu.vector_store %arg13[%c0_43, %c24], %118 {strides = array<i32>} : memref<16x32xf32, #tpu.memory_space<vmem>>, vector<16x8xf32>,
    %c0_44 = arith.constant 0 : index
    %c0_45 = arith.constant 0 : index
    %120 = vector.load %arg13[%c0_44, %c0_45] : memref<16x32xf32, #tpu.memory_space<vmem>>, vector<16x32xf32>
    %c0_46 = arith.constant 0 : index
    %c0_47 = arith.constant 0 : index
    %121 = vector.load %arg8[%c0_46, %c0_47] : memref<32x32xf32, #tpu.memory_space<vmem>>, vector<32x32xf32>
    %cst_48 = arith.constant dense<0.000000e+00> : vector<16x32xf32>
    %122 = tpu.matmul %120, %121, %cst_48 {dimension_numbers = #tpu.dot_dimension_numbers<[1], [0], [0], [1], [0, 0, 1, 1], [], []>} : vector<16x32xf32>, vector<32x32xf32>, vector<16x32xf32> -> vector<16x32xf32>
    %c0_49 = arith.constant 0 : index
    %c0_50 = arith.constant 0 : index
    %123 = vector.load %arg9[%c0_49, %c0_50] : memref<1x32xf32, #tpu.memory_space<vmem>>, vector<1x32xf32>
    %124 = vector.broadcast %123 : vector<1x32xf32> to vector<16x32xf32>
    %125 = arith.addf %122, %124 : vector<16x32xf32>
    %cst_51 = arith.constant 0.000000e+00 : f32
    %126 = vector.broadcast %cst_51 : f32 to vector<16x32xf32>
    %127 = arith.maximumf %125, %126 : vector<16x32xf32>
    %c0_52 = arith.constant 0 : index
    %c0_53 = arith.constant 0 : index
    %128 = vector.load %arg10[%c0_52, %c0_53] : memref<32x32xf32, #tpu.memory_space<vmem>>, vector<32x32xf32>
    %cst_54 = arith.constant dense<0.000000e+00> : vector<16x32xf32>
    %129 = tpu.matmul %127, %128, %cst_54 {dimension_numbers = #tpu.dot_dimension_numbers<[1], [0], [0], [1], [0, 0, 1, 1], [], []>} : vector<16x32xf32>, vector<32x32xf32>, vector<16x32xf32> -> vector<16x32xf32>
    %c0_55 = arith.constant 0 : index
    %c0_56 = arith.constant 0 : index
    %130 = vector.load %arg11[%c0_55, %c0_56] : memref<1x32xf32, #tpu.memory_space<vmem>>, vector<1x32xf32>
    %131 = vector.broadcast %130 : vector<1x32xf32> to vector<16x32xf32>
    %132 = arith.addf %129, %131 : vector<16x32xf32>
    %133 = vector.shape_cast %132 : vector<16x32xf32> to vector<2x8x32xf32>
    %c0_57 = arith.constant 0 : index
    %c0_58 = arith.constant 0 : index
    %c0_59 = arith.constant 0 : index
    %134 = vector.load %arg12[%c0_57, %c0_58, %c0_59] : memref<2x8x32xf32, #tpu.memory_space<vmem>>, vector<2x8x32xf32>
    tpu.vector_store %arg12[%c0_57, %c0_58, %c0_59], %133 {strides = array<i32>} : memref<2x8x32xf32, #tpu.memory_space<vmem>>, vector<2x8x32xf32>,
    return
  }
  func.func @transform_0(%arg0: i32) -> (i32, i32, i32) {
    %c0_i32 = arith.constant 0 : i32
    %c0_i32_0 = arith.constant 0 : i32
    %c0_i32_1 = arith.constant 0 : i32
    return %arg0, %c0_i32, %c0_i32_0 : i32, i32, i32
  }
  func.func @transform_1(%arg0: i32) -> (i32, i32) {
    %c0_i32 = arith.constant 0 : i32
    %c0_i32_0 = arith.constant 0 : i32
    %c0_i32_1 = arith.constant 0 : i32
    return %c0_i32, %c0_i32_0 : i32, i32
  }
  func.func @transform_2(%arg0: i32) -> (i32, i32) {
    %c0_i32 = arith.constant 0 : i32
    %c0_i32_0 = arith.constant 0 : i32
    %c0_i32_1 = arith.constant 0 : i32
    return %c0_i32, %c0_i32_0 : i32, i32
  }
  func.func @transform_3(%arg0: i32) -> (i32, i32) {
    %c0_i32 = arith.constant 0 : i32
    %c0_i32_0 = arith.constant 0 : i32
    %c0_i32_1 = arith.constant 0 : i32
    return %c0_i32, %c0_i32_0 : i32, i32
  }
  func.func @transform_4(%arg0: i32) -> (i32, i32) {
    %c0_i32 = arith.constant 0 : i32
    %c0_i32_0 = arith.constant 0 : i32
    %c0_i32_1 = arith.constant 0 : i32
    return %c0_i32, %c0_i32_0 : i32, i32
  }
  func.func @transform_5(%arg0: i32) -> (i32, i32) {
    %c0_i32 = arith.constant 0 : i32
    %c0_i32_0 = arith.constant 0 : i32
    %c0_i32_1 = arith.constant 0 : i32
    return %c0_i32, %c0_i32_0 : i32, i32
  }
  func.func @transform_6(%arg0: i32) -> (i32, i32) {
    %c0_i32 = arith.constant 0 : i32
    %c0_i32_0 = arith.constant 0 : i32
    %c0_i32_1 = arith.constant 0 : i32
    return %c0_i32, %c0_i32_0 : i32, i32
  }
  func.func @transform_7(%arg0: i32) -> (i32, i32) {
    %c0_i32 = arith.constant 0 : i32
    %c0_i32_0 = arith.constant 0 : i32
    %c0_i32_1 = arith.constant 0 : i32
    return %c0_i32, %c0_i32_0 : i32, i32
  }
  func.func @transform_8(%arg0: i32) -> (i32, i32) {
    %c0_i32 = arith.constant 0 : i32
    %c0_i32_0 = arith.constant 0 : i32
    %c0_i32_1 = arith.constant 0 : i32
    return %c0_i32, %c0_i32_0 : i32, i32
  }
  func.func @transform_9(%arg0: i32) -> (i32, i32) {
    %c0_i32 = arith.constant 0 : i32
    %c0_i32_0 = arith.constant 0 : i32
    %c0_i32_1 = arith.constant 0 : i32
    return %c0_i32, %c0_i32_0 : i32, i32
  }
  func.func @transform_10(%arg0: i32) -> (i32, i32) {
    %c0_i32 = arith.constant 0 : i32
    %c0_i32_0 = arith.constant 0 : i32
    %c0_i32_1 = arith.constant 0 : i32
    return %c0_i32, %c0_i32_0 : i32, i32
  }
  func.func @transform_11(%arg0: i32) -> (i32, i32, i32) {
    %c0_i32 = arith.constant 0 : i32
    %c0_i32_0 = arith.constant 0 : i32
    %c0_i32_1 = arith.constant 0 : i32
    return %arg0, %c0_i32, %c0_i32_0 : i32, i32, i32
  }
}

</mosaic_0001>

<bundles_post_ra>
// kernel: tpu_custom_call.1
= control target key start
LH: loop header
LB: loop body
LE: loop exit
PB: predicated region body
PF: predicated region fallthrough
CT: control target
= control target key end

     0   :  { %16 = vsyncpa [#allocation4], 0  ;;  %s2743_s0 = inlined_call_operand.hbm [shape: f32[2,8,32], index: 0, kind: input, shape index: {}]   ;;  %s2744_s1 = inlined_call_operand.hbm [shape: f32[32,32], index: 1, kind: input, shape index: {}]   ;;  %s2745_s2 = inlined_call_operand.hbm [shape: f32[32,32], index: 2, kind: input, shape index: {}]   ;;  %s2746_s3 = inlined_call_operand.hbm [shape: f32[32,32], index: 3, kind: input, shape index: {}]   ;;  %s2747_s4 = inlined_call_operand.vmem [shape: f32[1,32], index: 4, kind: input, shape index: {}]   ;;  %s2748_s5 = inlined_call_operand.vmem [shape: f32[1,32], index: 5, kind: input, shape index: {}]   ;;  %s2749_s6 = inlined_call_operand.vmem [shape: f32[1,32], index: 6, kind: input, shape index: {}]   ;;  %s2750_s7 = inlined_call_operand.hbm [shape: f32[32,32], index: 7, kind: input, shape index: {}]   ;;  %s2751_s8 = inlined_call_operand.vmem [shape: f32[1,32], index: 8, kind: input, shape index: {}]   ;;  %s2752_s9 = inlined_call_operand.hbm [shape: f32[32,32], index: 9, kind: input, shape index: {}]   ;;  %s2753_s10 = inlined_call_operand.vmem [shape: f32[1,32], index: 10, kind: input, shape index: {}]   ;;  %s2754_s11 = inlined_call_operand.hbm [shape: f32[2,8,32], index: 11, kind: output, shape index: {}]  }
   0x1   :  { %17 = vsyncpa [#allocation7], 0 }
   0x2   :  { %18 = vsyncpa [#allocation10], 0 }
   0x3   :  { %19 = vsyncpa [#allocation13], 0 }
   0x4   :  { %20 = vsyncpa [#allocation5], 0  ;;  %s2413_s17 = smov [#allocation6]   ;;  %s2414_s19 = smov [#allocation9]  }
   0x5   :  { %s38_s18 = sshll.u32 %s2413_s17, 4  ;;  %s62_s20 = sshll.u32 %s2414_s19, 4  ;;  %s39_s18 = int_to_ptr.vmem [resolvable:$true] %s38_s18  ;;  %s63_s20 = int_to_ptr.vmem [resolvable:$true] %s62_s20 }
   0x6   :  { %s2271_s21 = scalar_lea.vmem %s39_s18, 512  ;;  %p2276_p1 = scmp.lt.s32.totalorder %s39_s18, %s39_s18 }
   0x7   :  { %p2272_p0 = scmp.ne.s32.totalorder %s39_s18, %s2271_s21  ;;  %p2277_p2 = scmp.lt.s32.totalorder %s2271_s21, %s2271_s21 }
   0x9   :  { %p2278_p3 = por %p2277_p2, %p2276_p1 }
   0xb   :  { %p2279_p4 = pnand %p2278_p3, %p2272_p0 }
   0xd   :  { %2282 = shalt.err (!%p2279_p4)
}
   0xe   :  { %s2415_s22 = smov 128   ;;  %s2416_s23 = smov 8  }
   0xf   :  { %44 = dma.hbm_to_vmem [thread:$0]  %s2744_s1, 512, %s39_s18, [#allocation7], %s2415_s22, %s2415_s22, %s2416_s23  }
  0x10   :  { %s2291_s26 = scalar_lea.vmem %s63_s20, 512  ;;  %p2296_p6 = scmp.lt.s32.totalorder %s63_s20, %s63_s20 }
  0x11   :  { %p2292_p5 = scmp.ne.s32.totalorder %s63_s20, %s2291_s26  ;;  %p2297_p7 = scmp.lt.s32.totalorder %s2291_s26, %s2291_s26 }
  0x13   :  { %p2298_p8 = por %p2297_p7, %p2296_p6 }
  0x15   :  { %p2299_p9 = pnand %p2298_p8, %p2292_p5 }
  0x17   :  { %2302 = shalt.err (!%p2299_p9)
}
  0x18   :  { %68 = dma.hbm_to_vmem [thread:$0]  %s2746_s3, 512, %s63_s20, [#allocation10], %s2415_s22, %s2415_s22, %s2416_s23  }
  0x19   :  { %s2417_s29 = smov [#allocation3]   ;;  %s2418_s12 = smov [#allocation8]  }
  0x1a   :  { %s26_s30 = sshll.u32 %s2417_s29, 4  ;;  %s50_s13 = sshll.u32 %s2418_s12, 4  ;;  %s27_s30 = int_to_ptr.vmem [resolvable:$true] %s26_s30  ;;  %s51_s13 = int_to_ptr.vmem [resolvable:$true] %s50_s13 }
  0x1b   :  { %s2311_s1 = scalar_lea.vmem %s27_s30, 256  ;;  %p2316_p11 = scmp.lt.s32.totalorder %s27_s30, %s27_s30 }
  0x1c   :  { %p2312_p10 = scmp.ne.s32.totalorder %s27_s30, %s2311_s1  ;;  %p2317_p12 = scmp.lt.s32.totalorder %s2311_s1, %s2311_s1 }
  0x1e   :  { %p2318_p13 = por %p2317_p12, %p2316_p11 }
  0x20   :  { %p2319_p0 = pnand %p2318_p13, %p2312_p10 }
  0x22   :  { %2322 = shalt.err (!%p2319_p0)
}
  0x23   :  { %32 = dma.hbm_to_vmem [thread:$0]  %s2743_s0, 256, %s27_s30, [#allocation4], %s2415_s22, %s2415_s22, %s2416_s23  }
  0x24   :  { %s2331_s3 = scalar_lea.vmem %s51_s13, 512  ;;  %p2336_p2 = scmp.lt.s32.totalorder %s51_s13, %s51_s13 }
  0x25   :  { %p2332_p1 = scmp.ne.s32.totalorder %s51_s13, %s2331_s3  ;;  %p2337_p3 = scmp.lt.s32.totalorder %s2331_s3, %s2331_s3 }
  0x27   :  { %p2338_p4 = por %p2337_p3, %p2336_p2 }
  0x29   :  { %p2339_p5 = pnand %p2338_p4, %p2332_p1 }
  0x2b   :  { %2342 = shalt.err (!%p2339_p5)
}
  0x2c   :  { %56 = dma.hbm_to_vmem [thread:$0]  %s2745_s2, 512, %s51_s13, [#allocation7], %s2415_s22, %s2415_s22, %s2416_s23  }
  0x2d   :  { %s2419_s18 = smov [#allocation11]   ;;  %s2420_s20 = smov [#allocation12]  }
  0x2e   :  { %s80_s19 = sshll.u32 %s2419_s18, 4  ;;  %s94_s21 = sshll.u32 %s2420_s20, 4  ;;  %s81_s19 = int_to_ptr.vmem [resolvable:$true] %s80_s19  ;;  %s95_s21 = int_to_ptr.vmem [resolvable:$true] %s94_s21 }
  0x2f   :  { %s2351_s0 = scalar_lea.vmem %s81_s19, 512  ;;  %p2356_p7 = scmp.lt.s32.totalorder %s81_s19, %s81_s19 }
  0x30   :  { %p2352_p6 = scmp.ne.s32.totalorder %s81_s19, %s2351_s0  ;;  %p2357_p8 = scmp.lt.s32.totalorder %s2351_s0, %s2351_s0 }
  0x32   :  { %p2358_p9 = por %p2357_p8, %p2356_p7 }
  0x34   :  { %p2359_p10 = pnand %p2358_p9, %p2352_p6 }
  0x36   :  { %2362 = shalt.err (!%p2359_p10)
}
  0x37   :  { %86 = dma.hbm_to_vmem [thread:$0]  %s2750_s7, 512, %s81_s19, [#allocation10], %s2415_s22, %s2415_s22, %s2416_s23  }
  0x38   :  { %s2371_s2 = scalar_lea.vmem %s95_s21, 512  ;;  %p2376_p12 = scmp.lt.s32.totalorder %s95_s21, %s95_s21 }
  0x39   :  { %p2372_p11 = scmp.ne.s32.totalorder %s95_s21, %s2371_s2  ;;  %p2377_p13 = scmp.lt.s32.totalorder %s2371_s2, %s2371_s2 }
  0x3b   :  { %p2378_p0 = por %p2377_p13, %p2376_p12 }
  0x3d   :  { %p2379_p1 = pnand %p2378_p0, %p2372_p11 }
  0x3f   :  { %2382 = shalt.err (!%p2379_p1)
}
  0x40   :  { %100 = dma.hbm_to_vmem [thread:$0]  %s2752_s9, 512, %s95_s21, [#allocation13], %s2415_s22, %s2415_s22, %s2416_s23  }
  0x41   :  { %2403 = dma.done.wait [#allocation4], 256  }
  0x42   :  { %2404 = vsyncadd [#allocation4], 4294967040 }
  0x43   :  { %2405 = dma.done.wait [#allocation7], 1024  }
  0x44   :  { %2406 = vsyncadd [#allocation7], 4294966272 }
  0x45   :  { %2407 = dma.done.wait [#allocation10], 1024  }
  0x46   :  { %2408 = vsyncadd [#allocation10], 4294966272 }
  0x47   :  { %2409 = dma.done.wait [#allocation13], 512  }
  0x48   :  { %2410 = vsyncadd [#allocation13], 4294966784  ;;  %v126_v0 = vld [vmem:[#allocation6 + $0x18] sm:$0xff]  ;;  %v125_v2 = vld [vmem:[#allocation6 + $0x10] sm:$0xff]  ;;  %vm134_vm0 = vcmask 261120   ;;  %v2421_v10 = vmov 0.0   ;;  %v390_v27 = vlaneseq }
  0x49   :  { %v219_v1 = vld [vmem:[#allocation8 + $0x18] sm:$0xff]  ;;  %2079 = vmatprep.subr.mxu0 %v126_v0  ;;  %v218_v3 = vld [vmem:[#allocation8 + $0x10] sm:$0xff]  ;;  %v124_v4 = vld [vmem:[#allocation6 + $0x8] sm:$0xff]  ;;  %vm2422_vm1 = vmmov 0   ;;  %vm396_vm2 = vcmask 64512   ;;  %s2426_s12 = smov 104  }
  0x4a   :  { %2090 = vmatprep.subr.mxu1 %v219_v1  ;;  %2080 = vmatpush3.msra.mxu0 %v126_v0  ;;  %v217_v5 = vld [vmem:[#allocation8 + $0x8] sm:$0xff]  ;;  %v123_v6 = vld [vmem:[#allocation6] sm:$0xff]  ;;  %v121_v8 = vld [vmem:[#allocation3] sm:$0xff]  ;;  %v391_v28 = vshrl.u32 %v390_v27, 7  ;;  %v393_v29 = vand.u32 127, %v390_v27  ;;  %s2427_s13 = smov 16  }
  0x4b   :  { %2091 = vmatpush3.msra.mxu1 %v219_v1  ;;  %2081 = vmatprep.subr.mxu0 %v125_v2  ;;  %v216_v7 = vld [vmem:[#allocation8] sm:$0xff]  ;;  %v122_v9 = vld [vmem:[#allocation3 + $0x8] sm:$0xff]  ;;  %v304_v12 = vld [vmem:[#allocation9 + $0x10] sm:$0xff]  ;;  %v2424_v30 = vmov -1e+30   ;;  %vm1071_vm4 = vcmask 130112  }
  0x4c   :  { %2092 = vmatprep.subr.mxu1 %v218_v3  ;;  %2082 = vmatpush3.msra.mxu0 %v125_v2  ;;  %v305_v11 = vld [vmem:[#allocation9 + $0x18] sm:$0xff]  ;;  %v1978_v14 = vld [vmem:[%s2747_s4] ss:$0 sm:$0xff]  ;;  %v303_v16 = vld [vmem:[#allocation9 + $0x8] sm:$0xff]  ;;  %s2423_s4 = smov 120   ;;  %vm394_vm3 = vcmp.ge.s32.totalorder %v391_v28, %v393_v29  ;;  %vm1418_vm5 = vcmask 195712  }
  0x4d   :  { %2093 = vmatpush3.msra.mxu1 %v218_v3  ;;  %2083 = vmatprep.subr.mxu0 %v124_v4  ;;  %v1981_v17 = vld [vmem:[%s2748_s5] ss:$0 sm:$0xff]  ;;  %v2572_v31 = vsel %vm394_vm3, 0.0, %v2424_v30  ;;  %s2428_s1 = smov 24   ;;  %vm1765_vm6 = vcmask 261312   ;;  %s2429_s17 = smov [#allocation14]  }
  0x4e   :  { %2094 = vmatprep.subr.mxu1 %v217_v5  ;;  %2084 = vmatpush3.msra.mxu0 %v124_v4  ;;  %v302_v22 = vld [vmem:[#allocation9] sm:$0xff]  ;;  %s1963_s18 = sshll.u32 %s2429_s17, 4  ;;  %s1964_s18 = int_to_ptr.vmem [resolvable:$true] %s1963_s18 }
  0x4f   :  { %2095 = vmatpush3.msra.mxu1 %v217_v5  ;;  %2085 = vmatprep.subr.mxu0 %v123_v6  ;;  %v1984_v41 = vld [vmem:[%s2749_s6] ss:$0 sm:$0xff]  ;;  %s2425_s6 = smov 112   ;;  %p2388_p3 = scmp.lt.s32.totalorder %s1964_s18, %s1964_s18 }
  0x50   :  { %2096 = vmatprep.subr.mxu1 %v216_v7  ;;  %2086 = vmatpush3.msra.mxu0 %v123_v6 }
  0x51   :  { %2087 = vmatprep.mubr.msk.f32.mxu0 %vm134_vm0, %v121_v8  ;;  %2097 = vmatpush3.msra.mxu1 %v216_v7 }
  0x52   :  { %2098 = vmatprep.mubr.msk.f32.mxu1 %vm134_vm0, %v121_v8  ;;  %2088 = vmatmul.mubr.msk.f32.vlgmr.msra.gmra.mxu0 %vm134_vm0, %v122_v9 }
  0x53   :  { %2099 = vmatmul.mubr.msk.f32.vlgmr.msra.gmra.mxu1 %vm134_vm0, %v122_v9  ;;  %2109 = vmatprep.mubr.msk.f32.mxu0 %vm134_vm0, %v121_v8 }
  0x54   :  { %2112 = vmatprep.subr.mxu1 %v2421_v10  ;;  %2114 = vmatprep.mubr.msk.f32.mxu1 %vm2422_vm1, %v2421_v10 }
  0x55   :  { %2101 = vmatprep.subr.mxu0 %v305_v11 }
  0x56   :  { %2102 = vmatpush3.msra.mxu0 %v305_v11 }
  0x57   :  { %2103 = vmatprep.subr.mxu0 %v304_v12 }
  0x58   :  { %2104 = vmatpush3.msra.mxu0 %v304_v12 }
  0x59   :  { %2105 = vmatprep.subr.mxu0 %v303_v16 }
  0x5a   :  { %2106 = vmatpush3.msra.mxu0 %v303_v16 }
  0x5b   :  { %2107 = vmatprep.subr.mxu0 %v302_v22 }
  0x5c   :  { %2108 = vmatpush3.msra.mxu0 %v302_v22 }
  0x5d   :  { %2110 = vmatmul.mubr.msk.f32.vlgmr.msra.gmra.mxu0 %vm134_vm0, %v122_v9  ;;  %2122 = vmatprep.subr.mxu0 %v2421_v10 }
  0x5e   :  { %2124 = vmatprep.mubr.msk.f32.mxu0 %vm2422_vm1, %v2421_v10 }
 0x112   :  { %v2089_v13 = vpop.f32.mrf.mxu0 }
 0x113   :  { %v2100_v15 = vpop.f32.mrf.mxu1  ;;  %v213_v24 = vadd.f32 %v2089_v13, %v1978_v14 }
 0x114   :  { %v207_v18 = vpop.f32.mrf.mxu0  ;;  %v2549_v25 = vadd.f32 %v2100_v15, %v1981_v17 }
 0x115   :  { %v293_v19 = vpop.f32.mrf.mxu1  ;;  %v208_v20 = vadd.f32 %v1978_v14, %v207_v18  ;;  %v2557_v26 = vmul.f32 0.35355338, %v213_v24 }
 0x116   :  { %v2540_v21 = vadd.f32 %v1981_v17, %v293_v19 }
 0x117   :  { %v2542_v23 = vmul.f32 0.35355338, %v208_v20 }
 0x118   :  { %727 = vrot.lane.b32.xlu1 %v2540_v21, %s2423_s4  ;;  %2113 = vmatpush3.xpose.msk.msra.mxu1 %vm396_vm2, %v2540_v21 }
 0x119   :  { %2117 = vmatprep.subr.mxu1 %v2421_v10 }
 0x11b   :  { %2115 = vmatmul.mubr.msk.f32.vlgmr.msra.gmra.mxu1 %vm396_vm2, %v2542_v23 }
 0x11c   :  { %805 = vrot.lane.b32.xlu1 %v2549_v25, %s2423_s4  ;;  %2118 = vmatpush3.xpose.msk.msra.mxu1 %vm396_vm2, %v2549_v25 }
 0x11d   :  { %2119 = vmatprep.mubr.msk.f32.mxu1 %vm2422_vm1, %v2421_v10  ;;  %2127 = vmatprep.subr.mxu1 %v2421_v10  ;;  %v2111_v40 = vpop.f32.mrf.mxu0 }
 0x11e   :  { %v2581_v42 = vadd.f32 %v2111_v40, %v1984_v41 }
 0x11f   :  { %2120 = vmatmul.mubr.msk.f32.vlgmr.msra.gmra.mxu1 %vm396_vm2, %v2557_v26  ;;  %v379_v43 = vpop.f32.mrf.mxu0 }
 0x120   :  { %803 = vrot.lane.b32.xlu1 %v2557_v26, %s2423_s4  ;;  %2129 = vmatprep.mubr.msk.f32.mxu1 %vm2422_vm1, %v2421_v10  ;;  %v2583_v44 = vadd.f32 %v1984_v41, %v379_v43 }
 0x121   :  { %2128 = vmatpush3.msra.mxu1 %v2581_v42 }
 0x122   :  { %2137 = vmatprep.subr.mxu1 %v2421_v10  ;;  %2123 = vmatpush3.msra.mxu0 %v2583_v44 }
 0x123   :  { %2132 = vmatprep.subr.mxu0 %v2421_v10 }
 0x124   :  { %908 = vrot.lane.b32.xlu1 %v2583_v44, %s2423_s4 }
 0x18a   :  { %v728_v50 = vpop.permute.xlu1 %727 }
 0x18e   :  { %v806_v52 = vpop.permute.xlu1 %805 }
 0x192   :  { %v804_v54 = vpop.permute.xlu1 %803 }
 0x196   :  { %v909_v57 = vpop.permute.xlu1 %908 }
 0x1db   :  { %v469_v32 = vpop.f32.mrf.mxu1 }
 0x1dc   :  { %v470_v33 = vadd.f32 %v469_v32, %v2572_v31 }
 0x1dd   :  { %v2116_v34 = vpop.f32.mrf.mxu1 }
 0x1de   :  { %v549_v35 = vsel %vm396_vm2, %v470_v33, -inf }
 0x1df   :  { %550 = vmax.xlane.f32.xlu0 %v549_v35  ;;  %v545_v36 = vpop.f32.mrf.mxu1 }
 0x1e0   :  { %v546_v37 = vadd.f32 %v545_v36, %v2572_v31 }
 0x1e1   :  { %v2121_v38 = vpop.f32.mrf.mxu1 }
 0x1e2   :  { %v552_v39 = vsel %vm396_vm2, %v546_v37, -inf }
 0x1e3   :  { %553 = vmax.xlane.f32.xlu0 %v552_v39 }
 0x1f9   :  { %725 = vrot.lane.b32.xlu0 %v2542_v23, %s2423_s4 }
 0x268   :  { %v551_v45 = vpop.xlane.xlu0 %550 }
 0x269   :  { %v555_v46 = vsub.f32 %v470_v33, %v551_v45 }
 0x26b   :  { %v557_v47 = vmul.f32 1.442695, %v555_v46 }
 0x26c   :  { %v554_v48 = vpop.xlane.xlu0 %553 }
 0x26d   :  { %2231 = vpow2.f32 %v557_v47  ;;  %v556_v49 = vsub.f32 %v546_v37, %v554_v48 }
 0x26f   :  { %v559_v51 = vmul.f32 1.442695, %v556_v49 }
 0x270   :  { %v726_v56 = vpop.permute.xlu0 %725 }
 0x271   :  { %2233 = vpow2.f32 %v559_v51 }
 0x27a   :  { %v2593_v53 = vpop.eup %2231 }
 0x27b   :  { %2125 = vmatmul.mubr.msk.f32.vlgmr.msra.gmra.mxu0 %vm396_vm2, %v2593_v53 }
 0x27c   :  { %2133 = vmatpush3.xpose.msk.msra.mxu0 %vm396_vm2, %v728_v50  ;;  %2134 = vmatprep.mubr.msk.f32.mxu0 %vm2422_vm1, %v2421_v10 }
 0x27d   :  { %2142 = vmatprep.subr.mxu0 %v2421_v10 }
 0x27e   :  { %v2601_v55 = vpop.eup %2233 }
 0x27f   :  { %2130 = vmatmul.mubr.msk.f32.vlgmr.msra.gmra.mxu1 %vm396_vm2, %v2601_v55  ;;  %2135 = vmatmul.mubr.msk.f32.vlgmr.msra.gmra.mxu0 %vm396_vm2, %v726_v56 }
 0x280   :  { %2138 = vmatpush3.xpose.msk.msra.mxu1 %vm396_vm2, %v806_v52  ;;  %2139 = vmatprep.mubr.msk.f32.mxu1 %vm2422_vm1, %v2421_v10 }
 0x281   :  { %2143 = vmatpush3.msra.mxu0 %v909_v57  ;;  %2147 = vmatprep.subr.mxu1 %v2421_v10 }
 0x282   :  { %2144 = vmatprep.mubr.msk.f32.mxu0 %vm2422_vm1, %v2421_v10  ;;  %2152 = vmatprep.subr.mxu0 %v2421_v10 }
 0x283   :  { %2140 = vmatmul.mubr.msk.f32.vlgmr.msra.gmra.mxu1 %vm396_vm2, %v804_v54 }
 0x284   :  { %2149 = vmatprep.mubr.msk.f32.mxu1 %vm2422_vm1, %v2421_v10 }
 0x33b   :  { %v2616_v58 = vpop.f32.mrf.mxu0 }
 0x33d   :  { %v2126_v59 = vpop.f32.mrf.mxu0 }
 0x33f   :  { %v2618_v60 = vpop.f32.mrf.mxu1  ;;  %v799_v61 = vpop.f32.mrf.mxu0 }
 0x340   :  { %v800_v62 = vadd.f32 %v799_v61, %v2572_v31 }
 0x341   :  { %v2131_v63 = vpop.f32.mrf.mxu1  ;;  %v2136_v0 = vpop.f32.mrf.mxu0 }
 0x342   :  { %v881_v1 = vsel %vm396_vm2, %v800_v62, -inf }
 0x343   :  { %882 = vmax.xlane.f32.xlu1 %v881_v1  ;;  %v877_v2 = vpop.f32.mrf.mxu1 }
 0x344   :  { %v878_v3 = vadd.f32 %v877_v2, %v2572_v31 }
 0x345   :  { %v2141_v4 = vpop.f32.mrf.mxu1 }
 0x346   :  { %v884_v5 = vsel %vm396_vm2, %v878_v3, -inf }
 0x347   :  { %885 = vmax.xlane.f32.xlu0 %v884_v5 }
 0x354   :  { %1076 = vrot.lane.b32.xlu1 %v2540_v21, %s2425_s6 }
 0x358   :  { %1154 = vrot.lane.b32.xlu1 %v2549_v25, %s2425_s6 }
 0x35c   :  { %1074 = vrot.lane.b32.xlu1 %v2542_v23, %s2425_s6 }
 0x35d   :  { %985 = vrot.lane.b32.xlu0 %v2581_v42, %s2423_s4 }
 0x360   :  { %1152 = vrot.lane.b32.xlu1 %v2557_v26, %s2425_s6 }
 0x361   :  { %1256 = vrot.lane.b32.xlu0 %v2583_v44, %s2425_s6 }
 0x364   :  { %1332 = vrot.lane.b32.xlu1 %v2581_v42, %s2425_s6 }
 0x368   :  { %1423 = vrot.lane.b32.xlu1 %v2540_v21, %s2426_s12 }
 0x3cc   :  { %v883_v6 = vpop.xlane.xlu1 %882 }
 0x3cd   :  { %v887_v7 = vsub.f32 %v800_v62, %v883_v6 }
 0x3cf   :  { %v889_v8 = vmul.f32 1.442695, %v887_v7 }
 0x3d0   :  { %v1077_v9 = vpop.permute.xlu1 %1076  ;;  %v886_v11 = vpop.xlane.xlu0 %885 }
 0x3d1   :  { %2235 = vpow2.f32 %v889_v8  ;;  %v888_v12 = vsub.f32 %v878_v3, %v886_v11 }
 0x3d3   :  { %v891_v13 = vmul.f32 1.442695, %v888_v12 }
 0x3d4   :  { %v986_v14 = vpop.permute.xlu0 %985  ;;  %v1155_v15 = vpop.permute.xlu1 %1154 }
 0x3d5   :  { %2237 = vpow2.f32 %v891_v13  ;;  %2148 = vmatpush3.msra.mxu1 %v986_v14  ;;  %v561_v13 = vsel %vm396_vm2, %v2593_v53, 0.0 }
 0x3d6   :  { %2157 = vmatprep.subr.mxu1 %v2421_v10 }
 0x3d8   :  { %v1075_v16 = vpop.permute.xlu1 %1074  ;;  %v1257_v20 = vpop.permute.xlu0 %1256 }
 0x3dc   :  { %v1153_v18 = vpop.permute.xlu1 %1152 }
 0x3de   :  { %v2635_v17 = vpop.eup %2235 }
 0x3df   :  { %2145 = vmatmul.mubr.msk.f32.vlgmr.msra.gmra.mxu0 %vm396_vm2, %v2635_v17 }
 0x3e0   :  { %2153 = vmatpush3.xpose.msk.msra.mxu0 %vm396_vm2, %v1077_v9  ;;  %2154 = vmatprep.mubr.msk.f32.mxu0 %vm2422_vm1, %v2421_v10  ;;  %v1333_v21 = vpop.permute.xlu1 %1332 }
 0x3e1   :  { %2162 = vmatprep.subr.mxu0 %v2421_v10 }
 0x3e2   :  { %v2643_v19 = vpop.eup %2237 }
 0x3e3   :  { %2150 = vmatmul.mubr.msk.f32.vlgmr.msra.gmra.mxu1 %vm396_vm2, %v2643_v19  ;;  %2155 = vmatmul.mubr.msk.f32.vlgmr.msra.gmra.mxu0 %vm396_vm2, %v1075_v16  ;;  %v896_v2 = vsel %vm396_vm2, %v2643_v19, 0.0 }
 0x3e4   :  { %2158 = vmatpush3.xpose.msk.msra.mxu1 %vm396_vm2, %v1155_v15  ;;  %2163 = vmatpush3.msra.mxu0 %v1257_v20  ;;  %v1424_v38 = vpop.permute.xlu1 %1423  ;;  %v564_v15 = vsel %vm396_vm2, %v2601_v55, 0.0 }
 0x3e5   :  { %2159 = vmatprep.mubr.msk.f32.mxu1 %vm2422_vm1, %v2421_v10  ;;  %2167 = vmatprep.subr.mxu1 %v2421_v10 }
 0x3e6   :  { %2164 = vmatprep.mubr.msk.f32.mxu0 %vm2422_vm1, %v2421_v10  ;;  %2172 = vmatprep.subr.mxu0 %v2421_v10 }
 0x3e7   :  { %2160 = vmatmul.mubr.msk.f32.vlgmr.msra.gmra.mxu1 %vm396_vm2, %v1153_v18 }
 0x3e8   :  { %2168 = vmatpush3.msra.mxu1 %v1333_v21  ;;  %2169 = vmatprep.mubr.msk.f32.mxu1 %vm2422_vm1, %v2421_v10 }
 0x3e9   :  { %2177 = vmatprep.subr.mxu1 %v2421_v10 }
 0x49f   :  { %v2659_v22 = vpop.f32.mrf.mxu0 }
 0x4a1   :  { %v2146_v24 = vpop.f32.mrf.mxu0 }
 0x4a3   :  { %v2661_v27 = vpop.f32.mrf.mxu1  ;;  %v1148_v28 = vpop.f32.mrf.mxu0 }
 0x4a4   :  { %v1149_v29 = vadd.f32 %v1148_v28, %v2572_v31 }
 0x4a5   :  { %v2151_v30 = vpop.f32.mrf.mxu1  ;;  %v2156_v32 = vpop.f32.mrf.mxu0 }
 0x4a6   :  { %v1230_v33 = vsel %vm396_vm2, %v1149_v29, -inf }
 0x4a7   :  { %1231 = vmax.xlane.f32.xlu1 %v1230_v33  ;;  %v1226_v34 = vpop.f32.mrf.mxu1 }
 0x4a8   :  { %v1227_v35 = vadd.f32 %v1226_v34, %v2572_v31 }
 0x4a9   :  { %v2161_v36 = vpop.f32.mrf.mxu1 }
 0x4aa   :  { %v1233_v37 = vsel %vm396_vm2, %v1227_v35, -inf }
 0x4ab   :  { %1234 = vmax.xlane.f32.xlu0 %v1233_v37 }
 0x4b8   :  { %1421 = vrot.lane.b32.xlu1 %v2542_v23, %s2426_s12 }
 0x4c1   :  { %1501 = vrot.lane.b32.xlu0 %v2549_v25, %s2426_s12 }
 0x4c5   :  { %1499 = vrot.lane.b32.xlu0 %v2557_v26, %s2426_s12 }
 0x530   :  { %v1232_v39 = vpop.xlane.xlu1 %1231 }
 0x531   :  { %v1236_v40 = vsub.f32 %v1149_v29, %v1232_v39 }
 0x533   :  { %v1238_v41 = vmul.f32 1.442695, %v1236_v40 }
 0x534   :  { %v1235_v43 = vpop.xlane.xlu0 %1234  ;;  %v1422_v25 = vpop.permute.xlu1 %1421 }
 0x535   :  { %2239 = vpow2.f32 %v1238_v41  ;;  %v1237_v45 = vsub.f32 %v1227_v35, %v1235_v43 }
 0x537   :  { %v1240_v46 = vmul.f32 1.442695, %v1237_v45 }
 0x538   :  { %v1502_v48 = vpop.permute.xlu0 %1501 }
 0x539   :  { %2241 = vpow2.f32 %v1240_v46 }
 0x53c   :  { %v1500_v26 = vpop.permute.xlu0 %1499 }
 0x542   :  { %v2240_v47 = vpop.eup %2239 }
 0x543   :  { %2165 = vmatmul.mubr.msk.f32.vlgmr.msra.gmra.mxu0 %vm396_vm2, %v2240_v47 }
 0x544   :  { %2173 = vmatpush3.xpose.msk.msra.mxu0 %vm396_vm2, %v1424_v38  ;;  %2174 = vmatprep.mubr.msk.f32.mxu0 %vm2422_vm1, %v2421_v10 }
 0x545   :  { %2182 = vmatprep.subr.mxu0 %v2421_v10 }
 0x546   :  { %v2242_v23 = vpop.eup %2241 }
 0x547   :  { %2170 = vmatmul.mubr.msk.f32.vlgmr.msra.gmra.mxu1 %vm396_vm2, %v2242_v23  ;;  %2175 = vmatmul.mubr.msk.f32.vlgmr.msra.gmra.mxu0 %vm396_vm2, %v1422_v25  ;;  %v1245_v1 = vsel %vm396_vm2, %v2242_v23, 0.0 }
 0x548   :  { %2178 = vmatpush3.xpose.msk.msra.mxu1 %vm396_vm2, %v1502_v48  ;;  %2179 = vmatprep.mubr.msk.f32.mxu1 %vm2422_vm1, %v2421_v10 }
 0x549   :  { %2187 = vmatprep.subr.mxu1 %v2421_v10  ;;  %2184 = vmatprep.mubr.msk.f32.mxu0 %vm2422_vm1, %v2421_v10 }
 0x54b   :  { %2180 = vmatmul.mubr.msk.f32.vlgmr.msra.gmra.mxu1 %vm396_vm2, %v1500_v26 }
 0x54c   :  { %2189 = vmatprep.mubr.msk.f32.mxu1 %vm2422_vm1, %v2421_v10  ;;  %v893_v10 = vsel %vm396_vm2, %v2635_v17, 0.0 }
 0x603   :  { %v2689_v49 = vpop.f32.mrf.mxu0 }
 0x605   :  { %v2166_v50 = vpop.f32.mrf.mxu0 }
 0x607   :  { %v2691_v51 = vpop.f32.mrf.mxu1  ;;  %v1495_v52 = vpop.f32.mrf.mxu0 }
 0x608   :  { %v1496_v54 = vadd.f32 %v1495_v52, %v2572_v31 }
 0x609   :  { %v2171_v56 = vpop.f32.mrf.mxu1  ;;  %v2176_v57 = vpop.f32.mrf.mxu0 }
 0x60a   :  { %v1577_v59 = vsel %vm396_vm2, %v1496_v54, -inf }
 0x60b   :  { %1578 = vmax.xlane.f32.xlu1 %v1577_v59  ;;  %v1573_v61 = vpop.f32.mrf.mxu1 }
 0x60c   :  { %v1574_v62 = vadd.f32 %v1573_v61, %v2572_v31  ;;  %v1242_v31 = vsel %vm396_vm2, %v2240_v47, 0.0 }
 0x60d   :  { %v2181_v63 = vpop.f32.mrf.mxu1 }
 0x60e   :  { %v1580_v0 = vsel %vm396_vm2, %v1574_v62, -inf }
 0x60f   :  { %1581 = vmax.xlane.f32.xlu0 %v1580_v0 }
 0x61c   :  { %1679 = vrot.lane.b32.xlu1 %v2581_v42, %s2426_s12 }
 0x625   :  { %1603 = vrot.lane.b32.xlu0 %v2583_v44, %s2426_s12 }
 0x640   :  { %894 = vadd.xlane.f32.xlu1 %v893_v10  ;;  %v1773_v10 = vld [vmem:[#allocation11 + $0x18] sm:$0xff] }
 0x644   :  { %1246 = vadd.xlane.f32.xlu1 %v1245_v1  ;;  %897 = vadd.xlane.f32.xlu0 %v896_v2  ;;  %v1772_v1 = vld [vmem:[#allocation11 + $0x10] sm:$0xff] }
 0x648   :  { %1243 = vadd.xlane.f32.xlu0 %v1242_v31  ;;  %v1771_v31 = vld [vmem:[#allocation11 + $0x8] sm:$0xff] }
 0x694   :  { %v1579_v3 = vpop.xlane.xlu1 %1578 }
 0x695   :  { %v1583_v4 = vsub.f32 %v1496_v54, %v1579_v3  ;;  %v1770_v3 = vld [vmem:[#allocation11] sm:$0xff] }
 0x697   :  { %v1585_v42 = vmul.f32 1.442695, %v1583_v4 }
 0x698   :  { %v1680_v5 = vpop.permute.xlu1 %1679  ;;  %v1582_v6 = vpop.xlane.xlu0 %1581 }
 0x699   :  { %2243 = vpow2.f32 %v1585_v42  ;;  %v1584_v44 = vsub.f32 %v1574_v62, %v1582_v6  ;;  %2188 = vmatpush3.msra.mxu1 %v1680_v5 }
 0x69b   :  { %v1587_v7 = vmul.f32 1.442695, %v1584_v44 }
 0x69c   :  { %v1604_v8 = vpop.permute.xlu0 %1603 }
 0x69d   :  { %2245 = vpow2.f32 %v1587_v7  ;;  %2183 = vmatpush3.msra.mxu0 %v1604_v8 }
 0x69e   :  { %2192 = vmatprep.subr.mxu0 %v1773_v10 }
 0x6a6   :  { %v2244_v9 = vpop.eup %2243 }
 0x6a7   :  { %2185 = vmatmul.mubr.msk.f32.vlgmr.msra.gmra.mxu0 %vm396_vm2, %v2244_v9  ;;  %v1589_v11 = vsel %vm396_vm2, %v2244_v9, 0.0 }
 0x6a8   :  { %1590 = vadd.xlane.f32.xlu0 %v1589_v11  ;;  %2193 = vmatpush3.msra.mxu0 %v1773_v10 }
 0x6a9   :  { %2194 = vmatprep.subr.mxu0 %v1772_v1 }
 0x6aa   :  { %v2246_v12 = vpop.eup %2245  ;;  %2195 = vmatpush3.msra.mxu0 %v1772_v1 }
 0x6ab   :  { %2190 = vmatmul.mubr.msk.f32.vlgmr.msra.gmra.mxu1 %vm396_vm2, %v2246_v12  ;;  %v1592_v14 = vsel %vm396_vm2, %v2246_v12, 0.0  ;;  %2196 = vmatprep.subr.mxu0 %v1771_v31 }
 0x6ac   :  { %562 = vadd.xlane.f32.xlu0 %v561_v13  ;;  %1593 = vadd.xlane.f32.xlu1 %v1592_v14 }
 0x6ad   :  { %2197 = vmatpush3.msra.mxu0 %v1771_v31 }
 0x6ae   :  { %2198 = vmatprep.subr.mxu0 %v1770_v3 }
 0x6af   :  { %2199 = vmatpush3.msra.mxu0 %v1770_v3 }
 0x6b0   :  { %565 = vadd.xlane.f32.xlu1 %v564_v15 }
 0x6c9   :  { %v895_v16 = vpop.xlane.xlu1 %894 }
 0x6ca   :  { %2247 = vrcp.f32 %v895_v16 }
 0x6cd   :  { %v1247_v17 = vpop.xlane.xlu1 %1246  ;;  %v898_v18 = vpop.xlane.xlu0 %897 }
 0x6ce   :  { %2249 = vrcp.f32 %v1247_v17 }
 0x6cf   :  { %2251 = vrcp.f32 %v898_v18 }
 0x6d1   :  { %v1244_v19 = vpop.xlane.xlu0 %1243 }
 0x6d2   :  { %2253 = vrcp.f32 %v1244_v19 }
 0x6d7   :  { %v2248_v20 = vpop.eup %2247 }
 0x6d8   :  { %v901_v21 = vmul.f32 %v2248_v20, %v895_v16  ;;  %v1867_v16 = vld [vmem:[#allocation12 + $0x18] sm:$0xff] }
 0x6d9   :  { %2203 = vmatprep.subr.mxu1 %v1867_v16 }
 0x6da   :  { %v903_v24 = vsub.f32 2.0, %v901_v21  ;;  %2204 = vmatpush3.msra.mxu1 %v1867_v16 }
 0x6db   :  { %v2250_v53 = vpop.eup %2249 }
 0x6dc   :  { %v2252_v28 = vpop.eup %2251  ;;  %v1251_v29 = vmul.f32 %v2250_v53, %v1247_v17  ;;  %v905_v30 = vmul.f32 %v2248_v20, %v903_v24  ;;  %v1866_v17 = vld [vmem:[#allocation12 + $0x10] sm:$0xff]  ;;  %v2011_v20 = vld [vmem:[%s2751_s8] ss:$0 sm:$0xff]  ;;  %s2383_s8 = scalar_lea.vmem %s1964_s18, 256 }
 0x6dd   :  { %v902_v32 = vmul.f32 %v2252_v28, %v898_v18  ;;  %2205 = vmatprep.subr.mxu1 %v1866_v17  ;;  %v1865_v18 = vld [vmem:[#allocation12 + $0x8] sm:$0xff]  ;;  %p2384_p2 = scmp.ne.s32.totalorder %s1964_s18, %s2383_s8  ;;  %p2389_p4 = scmp.lt.s32.totalorder %s2383_s8, %s2383_s8 }
 0x6de   :  { %v1253_v33 = vsub.f32 2.0, %v1251_v29  ;;  %v1061_v55 = vmul.f32 %v2659_v22, %v905_v30  ;;  %2206 = vmatpush3.msra.mxu1 %v1866_v17 }
 0x6df   :  { %v2254_v34 = vpop.eup %2253  ;;  %v904_v35 = vsub.f32 2.0, %v902_v32  ;;  %2207 = vmatprep.subr.mxu1 %v1865_v18  ;;  %v2014_v32 = vld [vmem:[%s2753_s10] ss:$0 sm:$0xff]  ;;  %p2390_p5 = por %p2389_p4, %p2388_p3 }
 0x6e0   :  { %v1255_v36 = vmul.f32 %v2250_v53, %v1253_v33  ;;  %v1250_v37 = vmul.f32 %v2254_v34, %v1244_v19  ;;  %1065 = vrot.lane.b32.xlu0 %v1061_v55, %s2416_s23  ;;  %v1864_v19 = vld [vmem:[#allocation12] sm:$0xff]  ;;  %2208 = vmatpush3.msra.mxu1 %v1865_v18 }
 0x6e1   :  { %v906_v38 = vmul.f32 %v2252_v28, %v904_v35  ;;  %2209 = vmatprep.subr.mxu1 %v1864_v19  ;;  %p2391_p6 = pnand %p2390_p5, %p2384_p2 }
 0x6e2   :  { %v1252_v39 = vsub.f32 2.0, %v1250_v37  ;;  %v1409_v40 = vmul.f32 %v2691_v51, %v1255_v36  ;;  %2210 = vmatpush3.msra.mxu1 %v1864_v19 }
 0x6e3   :  { %v1062_v41 = vmul.f32 %v2661_v27, %v906_v38 }
 0x6e4   :  { %v1254_v43 = vmul.f32 %v2254_v34, %v1252_v39  ;;  %1414 = vrot.lane.b32.xlu0 %v1409_v40, %s2427_s13 }
 0x6e5   :  { %1067 = vrot.lane.b32.xlu1 %v1062_v41, %s2416_s23 }
 0x6e6   :  { %v1408_v45 = vmul.f32 %v2689_v49, %v1254_v43 }
 0x6e9   :  { %1412 = vrot.lane.b32.xlu1 %v1408_v45, %s2427_s13 }
 0x731   :  { %v1591_v22 = vpop.xlane.xlu0 %1590 }
 0x735   :  { %v1594_v46 = vpop.xlane.xlu1 %1593  ;;  %v563_v47 = vpop.xlane.xlu0 %562 }
 0x736   :  { %2255 = vrcp.f32 %v563_v47 }
 0x739   :  { %v566_v48 = vpop.xlane.xlu1 %565 }
 0x73a   :  { %2257 = vrcp.f32 %v566_v48 }
 0x73b   :  { %2259 = vrcp.f32 %v1591_v22 }
 0x73c   :  { %2261 = vrcp.f32 %v1594_v46 }
 0x743   :  { %v2256_v23 = vpop.eup %2255 }
 0x744   :  { %v569_v25 = vmul.f32 %v2256_v23, %v563_v47 }
 0x746   :  { %v571_v50 = vsub.f32 2.0, %v569_v25 }
 0x747   :  { %v2258_v26 = vpop.eup %2257 }
 0x748   :  { %v570_v51 = vmul.f32 %v2258_v26, %v566_v48  ;;  %v573_v27 = vmul.f32 %v2256_v23, %v571_v50  ;;  %v2260_v62 = vpop.eup %2259 }
 0x749   :  { %v2262_v0 = vpop.eup %2261 }
 0x74a   :  { %v572_v52 = vsub.f32 2.0, %v570_v51  ;;  %v721_v54 = vmul.f32 %v2616_v58, %v573_v27  ;;  %v1597_v58 = vmul.f32 %v2260_v62, %v1591_v22 }
 0x74c   :  { %v574_v56 = vmul.f32 %v2258_v26, %v572_v52  ;;  %723 = vst.msk [vmem:[#allocation2] sm:$0xff] %vm396_vm2, %v721_v54  ;;  %v1599_v2 = vsub.f32 2.0, %v1597_v58 }
 0x74e   :  { %v722_v49 = vmul.f32 %v2618_v60, %v574_v56  ;;  %v1598_v60 = vmul.f32 %v2262_v0, %v1594_v46  ;;  %v1601_v42 = vmul.f32 %v2260_v62, %v1599_v2 }
 0x750   :  { %724 = vst.msk [vmem:[#allocation2 + $0x8] sm:$0xff] %vm396_vm2, %v722_v49  ;;  %v1600_v4 = vsub.f32 2.0, %v1598_v60 }
 0x752   :  { %v1066_v57 = vpop.permute.xlu0 %1065  ;;  %v1602_v7 = vmul.f32 %v2262_v0, %v1600_v4 }
 0x753   :  { %1072 = vst.msk [vmem:[#allocation2] sm:$0xff] %vm1071_vm4, %v1066_v57 }
 0x756   :  { %v1415_v59 = vpop.permute.xlu0 %1414 }
 0x757   :  { %v1068_v61 = vpop.permute.xlu1 %1067 }
 0x758   :  { %1073 = vst.msk [vmem:[#allocation2 + $0x8] sm:$0xff] %vm1071_vm4, %v1068_v61 }
 0x759   :  { %1420 = vst.msk [vmem:[#allocation2 + $0x8] sm:$0xff] %vm1418_vm5, %v1415_v59 }
 0x75b   :  { %v1413_v63 = vpop.permute.xlu1 %1412 }
 0x75c   :  { %1419 = vst.msk [vmem:[#allocation2] sm:$0xff] %vm1418_vm5, %v1413_v63 }
 0x767   :  { %v1675_v5 = vpop.f32.mrf.mxu0 }
 0x768   :  { %v1755_v6 = vmul.f32 %v1675_v5, %v1601_v42 }
 0x769   :  { %v2186_v44 = vpop.f32.mrf.mxu0 }
 0x76a   :  { %1759 = vrot.lane.b32.xlu1 %v1755_v6, %s2428_s1 }
 0x76b   :  { %v1751_v8 = vpop.f32.mrf.mxu1 }
 0x76c   :  { %v1756_v9 = vmul.f32 %v1751_v8, %v1602_v7 }
 0x76d   :  { %v2191_v11 = vpop.f32.mrf.mxu1 }
 0x76e   :  { %1761 = vrot.lane.b32.xlu0 %v1756_v9, %s2428_s1 }
 0x7dc   :  { %v1760_v12 = vpop.permute.xlu1 %1759 }
 0x7dd   :  { %1766 = vst.msk [vmem:[#allocation2] sm:$0xff] %vm1765_vm6, %v1760_v12 }
 0x7e0   :  { %v1762_v13 = vpop.permute.xlu0 %1761 }
 0x7e1   :  { %1767 = vst.msk [vmem:[#allocation2 + $0x8] sm:$0xff] %vm1765_vm6, %v1762_v13 }
 0x7e4   :  { %v1768_v14 = vld [vmem:[#allocation2] sm:$0xff] }
 0x7e5   :  { %2200 = vmatprep.mubr.msk.f32.mxu0 %vm134_vm0, %v1768_v14 }
 0x7e8   :  { %v1769_v15 = vld [vmem:[#allocation2 + $0x8] sm:$0xff] }
 0x7e9   :  { %2201 = vmatmul.mubr.msk.f32.vlgmr.msra.gmra.mxu0 %vm134_vm0, %v1769_v15 }
 0x8a9   :  { %v2202_v21 = vpop.f32.mrf.mxu0 }
 0x8aa   :  { %v1859_v24 = vadd.f32 %v2202_v21, %v2011_v20 }
 0x8ab   :  { %v1853_v53 = vpop.f32.mrf.mxu0 }
 0x8ac   :  { %v1854_v28 = vadd.f32 %v2011_v20, %v1853_v53  ;;  %v1863_v30 = vmax.f32 %v1859_v24, 0.0 }
 0x8ae   :  { %v1862_v29 = vmax.f32 %v1854_v28, 0.0 }
 0x8b0   :  { %2211 = vmatprep.mubr.msk.f32.mxu1 %vm134_vm0, %v1862_v29 }
 0x8b1   :  { %2212 = vmatmul.mubr.msk.f32.vlgmr.msra.gmra.mxu1 %vm134_vm0, %v1863_v30 }
 0x971   :  { %v2213_v33 = vpop.f32.mrf.mxu1 }
 0x972   :  { %v1953_v55 = vadd.f32 %v2213_v33, %v2014_v32 }
 0x973   :  { %v1947_v34 = vpop.f32.mrf.mxu1 }
 0x974   :  { %1957 = vst.msk [vmem:[#allocation14 + $0x8] sm:$0xff] %vm134_vm0, %v1953_v55  ;;  %v1948_v35 = vadd.f32 %v2014_v32, %v1947_v34 }
 0x976   :  { %1956 = vst.msk [vmem:[#allocation14] sm:$0xff] %vm134_vm0, %v1948_v35 }
 0x977   :  { %2394 = shalt.err (!%p2391_p6)
}
 0x978   :  { %1969 = dma.vmem_to_hbm [thread:$0]  %s1964_s18, 256, %s2754_s11, [#allocation5], %s2415_s22, %s2415_s22, %s2416_s23  }
 0x979   :  { %2411 = dma.done.wait [#allocation5], 256  }
 0x97a   :  { %2412 = vsyncadd [#allocation5], 4294967040 }
 0x97b   :  { %1973 = vsyncpa [#allocation4], 1 }
 0x97c   :  { %1974 = vsyncpa [#allocation7], 1 }
 0x97d   :  { %1975 = vsyncpa [#allocation10], 1 }
 0x97e   :  { %1976 = vsyncpa [#allocation13], 1 }
 0x97f   :  { %1977 = vsyncpa [#allocation5], 1 }

</bundles_post_ra>
